<compile_context>
chip_gen: v7x
topology: tpu7x:2x2x1
jax: 0.10.0
libtpu: 0.0.40
codegen_flags: <defaults>
</compile_context>

<pallas_src>
import functools

import jax
import jax.numpy as jnp
from jax.experimental import pallas as pl
from jax.experimental.pallas import tpu as pltpu

LANE = 128
SUBLANE = 8


def _round_up(x, m):
    return ((x + m - 1) // m) * m


def _round_down(x, m):
    return (x // m) * m


def _soft_dice_kernel(logits_ref, labels_ref, numer_ref, denor_ref, *,
                      p_pow, hw_valid, chunk_rows, r_tile, has_tail):
    # logits_ref: (C, r_tile, 128)    labels_ref: (1, r_tile, 128) int32
    # numer_ref / denor_ref: (1, C, 8, 128) f32, resident across the tile axis
    j = pl.program_id(1)

    @pl.when(j == 0)
    def _():
        numer_ref[...] = jnp.zeros_like(numer_ref)
        denor_ref[...] = jnp.zeros_like(denor_ref)

    C = logits_ref.shape[0]
    n_chunks = r_tile // chunk_rows
    nv = chunk_rows // SUBLANE  # whole vreg-rows per chunk

    def body(ci, carry):
        r0 = pl.multiple_of(ci * chunk_rows, chunk_rows)
        logits = logits_ref[:, pl.ds(r0, chunk_rows), :].astype(jnp.float32)
        labels = labels_ref[:, pl.ds(r0, chunk_rows), :]

        if has_tail:
            # Global pixel index of every element in this chunk; pixels past
            # H*W (ragged tail / OOB block rows) are masked BEFORE the softmax
            # so garbage can never turn into inf/NaN.
            row = jax.lax.broadcasted_iota(jnp.int32, (1, chunk_rows, LANE), 1)
            lane = jax.lax.broadcasted_iota(jnp.int32, (1, chunk_rows, LANE), 2)
            pix = (j * r_tile + r0 + row) * LANE + lane
            valid = pix < hw_valid                        # (1, chunk, 128) bool
            logits = jnp.where(valid, logits, 0.0)
            labels = jnp.where(valid, labels, -1)

        # Softmax over channels: C is the leading (non-vreg) axis, so max/sum
        # are plain per-vreg VPU combines (no XLU work).
        m = jnp.max(logits, axis=0, keepdims=True)        # (1, chunk, 128)
        e = jnp.exp(logits - m)                           # EUP
        s = jnp.sum(e, axis=0, keepdims=True)             # (1, chunk, 128)
        r = pl.reciprocal(s, approx=True)                 # EUP slot
        r = r * (2.0 - s * r)                             # one Newton step
        preds = e * r                                     # (C, chunk, 128)

        # One-hot as a boolean mask fed straight into selects (no float
        # one-hot materialization / extra multiply). Labels of -1 (tail pad)
        # match no class.
        ch = jax.lax.broadcasted_iota(jnp.int32, preds.shape, 0)
        mask = labels == ch                               # (C, chunk, 128)

        if p_pow == 1:
            preds_p = preds
        elif p_pow == 2:
            preds_p = preds * preds
        else:
            preds_p = preds ** p_pow
        # onehot**p == onehot for any p > 0.

        numer_t = jnp.where(mask, preds, 0.0)
        onehot_t = jnp.where(mask, 1.0, 0.0)
        if has_tail:
            denor_t = jnp.where(valid, preds_p, 0.0) + onehot_t
        else:
            denor_t = preds_p + onehot_t

        # Reduce only across whole vregs (pure VPU adds, no XLU); the final
        # 8-sublane x 128-lane reduce happens in the JAX epilogue.
        numer_v = jnp.sum(numer_t.reshape(C, nv, SUBLANE, LANE), axis=1)
        denor_v = jnp.sum(denor_t.reshape(C, nv, SUBLANE, LANE), axis=1)
        numer_ref[...] += numer_v[None]
        denor_ref[...] += denor_v[None]
        return carry

    jax.lax.fori_loop(0, n_chunks, body, 0)


def soft_dice_loss(logits, labels, *, p=1, smooth=1.0,
                   target_block_bytes=4 * 1024 * 1024,
                   chunk_bytes=512 * 1024,
                   vmem_limit_bytes=48 * 1024 * 1024):
    """logits: (N, C, H, W) float (f32/bf16); labels: (N, H, W) int -> f32 loss."""
    N, C, H, W = logits.shape
    if labels.shape != (N, H, W):
        raise ValueError(f"Expected labels of shape {(N, H, W)}, got {labels.shape}")
    HW = H * W
    itemsize = jnp.dtype(logits.dtype).itemsize

    HW128 = _round_up(HW, LANE)
    R_total = HW128 // LANE

    # Inner compute chunk (rows of 128 pixels): keeps each f32 elementwise
    # temporary around `chunk_bytes`, so big DMA blocks stay VMEM-friendly on
    # v7x (64 MiB) and for large class counts.
    chunk_rows = max(SUBLANE,
                     _round_down(chunk_bytes // (C * LANE * 4), SUBLANE))
    chunk_rows = min(chunk_rows, _round_up(R_total, SUBLANE))

    # DMA block (grid tile): ~target_block_bytes of logits, a multiple of
    # chunk_rows so the inner loop divides it evenly. Large blocks amortize
    # the fixed per-grid-step cost toward the HBM roofline.
    r_target = max(chunk_rows,
                   _round_down(target_block_bytes // (C * LANE * itemsize),
                               chunk_rows))
    R_tile = min(r_target, _round_up(R_total, chunk_rows))
    num_tiles = pl.cdiv(R_total, R_tile)
    # True whenever the last block covers pixels past H*W; handled in-kernel.
    has_tail = (num_tiles * R_tile * LANE) != HW

    # Contiguous reshapes only (no HBM transpose of the logits tensor).
    logits3d = logits.reshape(N, C, HW)
    labels3d = labels.reshape(N, 1, HW)
    if labels3d.dtype != jnp.int32:
        labels3d = labels3d.astype(jnp.int32)
    if HW128 != HW:
        # Only when H*W is not a multiple of the 128-lane width: pad just
        # enough for the (rows, 128) reshape. The in-kernel tail mask (keyed
        # on the true H*W) already excludes these pixels from the sums.
        logits3d = jnp.pad(logits3d, ((0, 0), (0, 0), (0, HW128 - HW)))
        labels3d = jnp.pad(labels3d, ((0, 0), (0, 0), (0, HW128 - HW)),
                           constant_values=-1)

    # Pixels occupy both sublanes and lanes; channels are a leading block dim.
    logits4d = logits3d.reshape(N, C, R_total, LANE)
    labels4d = labels3d.reshape(N, 1, R_total, LANE)

    kernel = functools.partial(_soft_dice_kernel, p_pow=p, hw_valid=HW,
                               chunk_rows=chunk_rows, r_tile=R_tile,
                               has_tail=has_tail)

    numer_part, denor_part = pl.pallas_call(
        kernel,
        out_shape=(jax.ShapeDtypeStruct((N, C, SUBLANE, LANE), jnp.float32),
                   jax.ShapeDtypeStruct((N, C, SUBLANE, LANE), jnp.float32)),
        grid_spec=pltpu.PrefetchScalarGridSpec(
            num_scalar_prefetch=0,
            grid=(N, num_tiles),
            in_specs=[
                pl.BlockSpec((None, C, R_tile, LANE),
                             lambda n, j: (n, 0, j, 0)),      # logits tile
                pl.BlockSpec((None, 1, R_tile, LANE),
                             lambda n, j: (n, 0, j, 0)),      # labels tile
            ],
            out_specs=[
                pl.BlockSpec((1, C, SUBLANE, LANE),
                             lambda n, j: (n, 0, 0, 0)),      # per-batch numer
                pl.BlockSpec((1, C, SUBLANE, LANE),
                             lambda n, j: (n, 0, 0, 0)),      # per-batch denor
            ],
        ),
        compiler_params=pltpu.CompilerParams(
            # Batch axis parallel (v7x megacore splits it); pixel tiles reduce.
            dimension_semantics=("parallel", "arbitrary"),
            vmem_limit_bytes=vmem_limit_bytes),
    )(logits4d, labels4d)

    # Tiny finalize in plain JAX: cross-lane/sublane reduce + dice + mean.
    numer = jnp.sum(numer_part, axis=(0, 2, 3))   # (C,)
    denor = jnp.sum(denor_part, axis=(0, 2, 3))   # (C,)
    dice = (2.0 * numer + float(smooth)) / (denor + float(smooth))
    return 1.0 - jnp.mean(dice)


def _reference(logits, labels, p=1, smooth=1.0):
    num_classes = logits.shape[1]
    onehot = jax.nn.one_hot(labels, num_classes, dtype=jnp.float32)      # (N,H,W,C)
    onehot = jnp.transpose(onehot, (0, 3, 1, 2))                         # (N,C,H,W)
    preds = jax.nn.softmax(logits.astype(jnp.float32), axis=1)
    numer = jnp.sum(preds * onehot, axis=(0, 2, 3))
    denor = jnp.sum(preds ** p + onehot ** p, axis=(0, 2, 3))
    dice = (2.0 * numer + smooth) / (denor + smooth)
    return 1.0 - jnp.mean(dice)


if __name__ == "__main__":
    key = jax.random.PRNGKey(0)
    k1, k2, k3, k4 = jax.random.split(key, 4)

    # Primary shape from the module spec (exercises the in-kernel ragged tail).
    N, C, H, W = 2, 4, 16, 16
    logits = jax.random.normal(k1, (N, C, H, W), dtype=jnp.float32)
    labels = jax.random.randint(k2, (N, H, W), 0, C, dtype=jnp.int32)
    loss = jax.block_until_ready(soft_dice_loss(logits, labels, p=1, smooth=1.0))
    ref = jax.block_until_ready(_reference(logits, labels, p=1, smooth=1.0))
    assert jnp.allclose(loss, ref, rtol=1e-3, atol=1e-3), (loss, ref)

    # Secondary check: non-power-of-two C, p=2, H*W a multiple of 1024
    # (exercises the tail-free fast path).
    N2, C2, H2, W2 = 1, 5, 32, 32
    logits2 = jax.random.normal(k3, (N2, C2, H2, W2), dtype=jnp.float32)
    labels2 = jax.random.randint(k4, (N2, H2, W2), 0, C2, dtype=jnp.int32)
    loss2 = jax.block_until_ready(soft_dice_loss(logits2, labels2, p=2, smooth=1.0))
    ref2 = jax.block_until_ready(_reference(logits2, labels2, p=2, smooth=1.0))
    assert jnp.allclose(loss2, ref2, rtol=1e-3, atol=1e-3), (loss2, ref2)

    print("KERNEL_OK")
</pallas_src>

<mosaic_0001>
module attributes {stable_mosaic.version = 11 : i64} {
  func.func @_soft_dice_kernel(%arg0: i32, %arg1: i32, %arg2: memref<1x4x8x128xf32, #tpu.memory_space<vmem>>, %arg3: memref<1x1x8x128xi32, #tpu.memory_space<vmem>>, %arg4: memref<1x4x8x128xf32, #tpu.memory_space<vmem>>, %arg5: memref<1x4x8x128xf32, #tpu.memory_space<vmem>>) attributes {dimension_semantics = [#tpu.dimension_semantics<parallel>, #tpu.dimension_semantics<arbitrary>], iteration_bounds = array<i64: 2, 1>, scalar_prefetch = 0 : i64, scratch_operands = 0 : i64, tpu.core_type = #tpu.core_type<tc>, window_params = [{transform_indices = @transform_0, window_bounds = array<i64: 1, 4, 8, 128>}, {transform_indices = @transform_1, window_bounds = array<i64: 1, 1, 8, 128>}, {transform_indices = @transform_2, window_bounds = array<i64: 1, 4, 8, 128>}, {transform_indices = @transform_3, window_bounds = array<i64: 1, 4, 8, 128>}]} {
    %c0_i32 = arith.constant 0 : i32
    %0 = arith.cmpi eq, %arg1, %c0_i32 : i32
    %1 = arith.extui %0 : i1 to i32
    %c0_i32_0 = arith.constant 0 : i32
    %2 = arith.cmpi ne, %1, %c0_i32_0 : i32
    scf.if %2 {
      %cst_33 = arith.constant 0.000000e+00 : f32
      %67 = vector.broadcast %cst_33 : f32 to vector<1x4x8x128xf32>
      %c0_34 = arith.constant 0 : index
      %c0_35 = arith.constant 0 : index
      %c0_36 = arith.constant 0 : index
      %c0_37 = arith.constant 0 : index
      %68 = vector.load %arg4[%c0_34, %c0_35, %c0_36, %c0_37] : memref<1x4x8x128xf32, #tpu.memory_space<vmem>>, vector<1x4x8x128xf32>
      tpu.vector_store %arg4[%c0_34, %c0_35, %c0_36, %c0_37], %67 {strides = array<i32>} : memref<1x4x8x128xf32, #tpu.memory_space<vmem>>, vector<1x4x8x128xf32>,
      %cst_38 = arith.constant 0.000000e+00 : f32
      %69 = vector.broadcast %cst_38 : f32 to vector<1x4x8x128xf32>
      %c0_39 = arith.constant 0 : index
      %c0_40 = arith.constant 0 : index
      %c0_41 = arith.constant 0 : index
      %c0_42 = arith.constant 0 : index
      %70 = vector.load %arg5[%c0_39, %c0_40, %c0_41, %c0_42] : memref<1x4x8x128xf32, #tpu.memory_space<vmem>>, vector<1x4x8x128xf32>
      tpu.vector_store %arg5[%c0_39, %c0_40, %c0_41, %c0_42], %69 {strides = array<i32>} : memref<1x4x8x128xf32, #tpu.memory_space<vmem>>, vector<1x4x8x128xf32>,
    } else {
    }
    %c0_i32_1 = arith.constant 0 : i32
    %c8_i32 = arith.constant 8 : i32
    %3 = arith.muli %c0_i32_1, %c8_i32 : i32
    %4 = tpu.assume_multiple %3, 8 : i32
    %c0 = arith.constant 0 : index
    %c0_2 = arith.constant 0 : index
    %5 = arith.index_cast %4 : i32 to index
    %c0_3 = arith.constant 0 : index
    %6 = vector.load %arg2[%c0, %c0_2, %5, %c0_3] : memref<1x4x8x128xf32, #tpu.memory_space<vmem>>, vector<1x4x8x128xf32>
    %7 = vector.shape_cast %6 : vector<1x4x8x128xf32> to vector<4x8x128xf32>
    %c0_4 = arith.constant 0 : index
    %c0_5 = arith.constant 0 : index
    %8 = arith.index_cast %4 : i32 to index
    %c0_6 = arith.constant 0 : index
    %9 = vector.load %arg3[%c0_4, %c0_5, %8, %c0_6] : memref<1x1x8x128xi32, #tpu.memory_space<vmem>>, vector<1x1x8x128xi32>
    %10 = vector.shape_cast %9 : vector<1x1x8x128xi32> to vector<1x8x128xi32>
    %11 = tpu.iota {dimensions = array<i32: 1>} : vector<1x8x128xi32>
    %12 = tpu.iota {dimensions = array<i32: 2>} : vector<1x8x128xi32>
    %c8_i32_7 = arith.constant 8 : i32
    %13 = arith.muli %arg1, %c8_i32_7 : i32
    %14 = arith.addi %13, %4 : i32
    %15 = vector.broadcast %14 : i32 to vector<1x8x128xi32>
    %16 = arith.addi %15, %11 : vector<1x8x128xi32>
    %c128_i32 = arith.constant 128 : i32
    %17 = vector.broadcast %c128_i32 : i32 to vector<1x8x128xi32>
    %18 = arith.muli %16, %17 : vector<1x8x128xi32>
    %19 = arith.addi %18, %12 : vector<1x8x128xi32>
    %c256_i32 = arith.constant 256 : i32
    %20 = vector.broadcast %c256_i32 : i32 to vector<1x8x128xi32>
    %21 = arith.cmpi slt, %19, %20 : vector<1x8x128xi32>
    %cst = arith.constant 0.000000e+00 : f32
    %22 = vector.shape_cast %21 : vector<1x8x128xi1> to vector<1x8x128xi1>
    %23 = vector.broadcast %22 : vector<1x8x128xi1> to vector<4x8x128xi1>
    %24 = vector.broadcast %cst : f32 to vector<4x8x128xf32>
    %25 = arith.select %23, %7, %24 : vector<4x8x128xi1>, vector<4x8x128xf32>
    %c-1_i32 = arith.constant -1 : i32
    %26 = vector.broadcast %c-1_i32 : i32 to vector<1x8x128xi32>
    %27 = arith.select %21, %10, %26 : vector<1x8x128xi1>, vector<1x8x128xi32>
    %cst_8 = arith.constant dense<0xFF800000> : vector<8x128xf32>
    %28 = vector.multi_reduction <maximumf>, %25, %cst_8 [0] : vector<4x8x128xf32> to vector<8x128xf32>
    %29 = vector.shape_cast %28 : vector<8x128xf32> to vector<1x8x128xf32>
    %30 = vector.broadcast %29 : vector<1x8x128xf32> to vector<4x8x128xf32>
    %31 = arith.subf %25, %30 : vector<4x8x128xf32>
    %32 = math.exp %31 : vector<4x8x128xf32>
    %cst_9 = arith.constant dense<0.000000e+00> : vector<8x128xf32>
    %33 = vector.multi_reduction <add>, %32, %cst_9 [0] : vector<4x8x128xf32> to vector<8x128xf32>
    %34 = vector.shape_cast %33 : vector<8x128xf32> to vector<1x8x128xf32>
    %35 = tpu.reciprocal %34 {approx = true} : vector<1x8x128xf32> -> vector<1x8x128xf32>
    %36 = arith.mulf %34, %35 : vector<1x8x128xf32>
    %cst_10 = arith.constant 2.000000e+00 : f32
    %37 = vector.broadcast %cst_10 : f32 to vector<1x8x128xf32>
    %38 = arith.subf %37, %36 : vector<1x8x128xf32>
    %39 = arith.mulf %35, %38 : vector<1x8x128xf32>
    %40 = vector.broadcast %39 : vector<1x8x128xf32> to vector<4x8x128xf32>
    %41 = arith.mulf %32, %40 : vector<4x8x128xf32>
    %42 = tpu.iota {dimensions = array<i32: 0>} : vector<4x8x128xi32>
    %43 = vector.broadcast %27 : vector<1x8x128xi32> to vector<4x8x128xi32>
    %44 = arith.cmpi eq, %43, %42 : vector<4x8x128xi32>
    %cst_11 = arith.constant 0.000000e+00 : f32
    %45 = vector.broadcast %cst_11 : f32 to vector<4x8x128xf32>
    %46 = arith.select %44, %41, %45 : vector<4x8x128xi1>, vector<4x8x128xf32>
    %cst_12 = arith.constant 1.000000e+00 : f32
    %cst_13 = arith.constant 0.000000e+00 : f32
    %47 = vector.broadcast %cst_12 : f32 to vector<4x8x128xf32>
    %48 = vector.broadcast %cst_13 : f32 to vector<4x8x128xf32>
    %49 = arith.select %44, %47, %48 : vector<4x8x128xi1>, vector<4x8x128xf32>
    %cst_14 = arith.constant 0.000000e+00 : f32
    %50 = vector.shape_cast %21 : vector<1x8x128xi1> to vector<1x8x128xi1>
    %51 = vector.broadcast %50 : vector<1x8x128xi1> to vector<4x8x128xi1>
    %52 = vector.broadcast %cst_14 : f32 to vector<4x8x128xf32>
    %53 = arith.select %51, %41, %52 : vector<4x8x128xi1>, vector<4x8x128xf32>
    %54 = arith.addf %53, %49 : vector<4x8x128xf32>
    %55 = vector.shape_cast %46 : vector<4x8x128xf32> to vector<4x1x8x128xf32>
    %cst_15 = arith.constant dense<0.000000e+00> : vector<4x8x128xf32>
    %56 = vector.multi_reduction <add>, %55, %cst_15 [1] : vector<4x1x8x128xf32> to vector<4x8x128xf32>
    %57 = vector.shape_cast %54 : vector<4x8x128xf32> to vector<4x1x8x128xf32>
    %cst_16 = arith.constant dense<0.000000e+00> : vector<4x8x128xf32>
    %58 = vector.multi_reduction <add>, %57, %cst_16 [1] : vector<4x1x8x128xf32> to vector<4x8x128xf32>
    %c0_17 = arith.constant 0 : index
    %c0_18 = arith.constant 0 : index
    %c0_19 = arith.constant 0 : index
    %c0_20 = arith.constant 0 : index
    %59 = vector.load %arg4[%c0_17, %c0_18, %c0_19, %c0_20] : memref<1x4x8x128xf32, #tpu.memory_space<vmem>>, vector<1x4x8x128xf32>
    %60 = vector.shape_cast %56 : vector<4x8x128xf32> to vector<1x4x8x128xf32>
    %61 = arith.addf %59, %60 : vector<1x4x8x128xf32>
    %c0_21 = arith.constant 0 : index
    %c0_22 = arith.constant 0 : index
    %c0_23 = arith.constant 0 : index
    %c0_24 = arith.constant 0 : index
    %62 = vector.load %arg4[%c0_21, %c0_22, %c0_23, %c0_24] : memref<1x4x8x128xf32, #tpu.memory_space<vmem>>, vector<1x4x8x128xf32>
    tpu.vector_store %arg4[%c0_21, %c0_22, %c0_23, %c0_24], %61 {strides = array<i32>} : memref<1x4x8x128xf32, #tpu.memory_space<vmem>>, vector<1x4x8x128xf32>,
    %c0_25 = arith.constant 0 : index
    %c0_26 = arith.constant 0 : index
    %c0_27 = arith.constant 0 : index
    %c0_28 = arith.constant 0 : index
    %63 = vector.load %arg5[%c0_25, %c0_26, %c0_27, %c0_28] : memref<1x4x8x128xf32, #tpu.memory_space<vmem>>, vector<1x4x8x128xf32>
    %64 = vector.shape_cast %58 : vector<4x8x128xf32> to vector<1x4x8x128xf32>
    %65 = arith.addf %63, %64 : vector<1x4x8x128xf32>
    %c0_29 = arith.constant 0 : index
    %c0_30 = arith.constant 0 : index
    %c0_31 = arith.constant 0 : index
    %c0_32 = arith.constant 0 : index
    %66 = vector.load %arg5[%c0_29, %c0_30, %c0_31, %c0_32] : memref<1x4x8x128xf32, #tpu.memory_space<vmem>>, vector<1x4x8x128xf32>
    tpu.vector_store %arg5[%c0_29, %c0_30, %c0_31, %c0_32], %65 {strides = array<i32>} : memref<1x4x8x128xf32, #tpu.memory_space<vmem>>, vector<1x4x8x128xf32>,
    %c1_i32 = arith.constant 1 : i32
    return
  }
  func.func @transform_0(%arg0: i32, %arg1: i32) -> (i32, i32, i32, i32) {
    %c0_i32 = arith.constant 0 : i32
    %c0_i32_0 = arith.constant 0 : i32
    %c0_i32_1 = arith.constant 0 : i32
    return %arg0, %c0_i32, %arg1, %c0_i32_0 : i32, i32, i32, i32
  }
  func.func @transform_1(%arg0: i32, %arg1: i32) -> (i32, i32, i32, i32) {
    %c0_i32 = arith.constant 0 : i32
    %c0_i32_0 = arith.constant 0 : i32
    %c0_i32_1 = arith.constant 0 : i32
    return %arg0, %c0_i32, %arg1, %c0_i32_0 : i32, i32, i32, i32
  }
  func.func @transform_2(%arg0: i32, %arg1: i32) -> (i32, i32, i32, i32) {
    %c0_i32 = arith.constant 0 : i32
    %c0_i32_0 = arith.constant 0 : i32
    %c0_i32_1 = arith.constant 0 : i32
    %c0_i32_2 = arith.constant 0 : i32
    return %arg0, %c0_i32, %c0_i32_0, %c0_i32_1 : i32, i32, i32, i32
  }
  func.func @transform_3(%arg0: i32, %arg1: i32) -> (i32, i32, i32, i32) {
    %c0_i32 = arith.constant 0 : i32
    %c0_i32_0 = arith.constant 0 : i32
    %c0_i32_1 = arith.constant 0 : i32
    %c0_i32_2 = arith.constant 0 : i32
    return %arg0, %c0_i32, %c0_i32_0, %c0_i32_1 : i32, i32, i32, i32
  }
}

</mosaic_0001>

<bundles_post_ra>
// kernel: tpu_custom_call.1
= control target key start
LH: loop header
LB: loop body
LE: loop exit
PB: predicated region body
PF: predicated region fallthrough
CT: control target
= control target key end

     0   :  { %9 = vsyncpa [#allocation3], 0  ;;  %s1129_s0 = inlined_call_operand.hbm [shape: f32[2,4,2,128], index: 0, kind: input, shape index: {}]   ;;  %s1130_s1 = inlined_call_operand.hbm [shape: s32[2,1,2,128], index: 1, kind: input, shape index: {}]   ;;  %s1131_s2 = inlined_call_operand.hbm [shape: f32[2,4,8,128], index: 2, kind: output, shape index: {0}]   ;;  %s1132_s3 = inlined_call_operand.hbm [shape: f32[2,4,8,128], index: 3, kind: output, shape index: {1}]  }
   0x1   :  { %11 = vsyncpa [#allocation3 + $0x1], 0 }
   0x2   :  { %12 = vsyncpa [#allocation6], 0 }
   0x3   :  { %14 = vsyncpa [#allocation6 + $0x1], 0 }
   0x4   :  { %15 = vsyncpa [#allocation4], 0 }
   0x5   :  { %17 = vsyncpa [#allocation4 + $0x1], 0 }
   0x6   :  { %18 = vsyncpa [#allocation9], 0 }
   0x7   :  { %20 = vsyncpa [#allocation9 + $0x1], 0  ;;  %s874_s12 = smov 0   ;;  %s876_s13 = smov 0  }
   0x8   :  { %s878_s14 = smov 0   ;;  %s880_s15 = smov 0  }
   0x9   :  { %s882_s16 = smov 0   ;;  %s884_s17 = smov 0  }
   0xa LB: > { %s588_s18 = sadd.s32 4294967295, %s839_s17   ;;  %s589_s19 = sadd.s32 4294967294, %s839_s17   ;;  %s839_s17 = sphi %s884_s17, %s26_s17   ;;  %s835_s16 = sphi %s882_s16, %s1144_s16   ;;  %s831_s15 = sphi %s880_s15, %s1143_s15   ;;  %s827_s14 = sphi %s878_s14, %s1142_s14   ;;  %s823_s13 = sphi %s876_s13, %s1141_s13   ;;  %s819_s12 = sphi %s874_s12, %s1140_s12  }
   0xb   : > { %s38_s20 = sadd.s32 1, %s835_s16  ;;  %s47_s21 = sadd.s32 1, %s827_s14 }
   0xc   : > { %p40_p0 = scmp.ge.s32.totalorder %s38_s20, 2  ;;  %p54_p1 = scmp.ne.s32.totalorder %s827_s14, %s823_s13 }
   0xd   : > { %p55_p2 = scmp.eq.s32.totalorder %s839_s17, 0  ;;  %p60_p3 = scmp.ne.s32.totalorder %s823_s13, %s819_s12 }
   0xe   : > { %s1146_s20 = smov (%p40_p0, %s38_s20), 0  ;;  %p61_p5 = scmp.eq.s32.totalorder %s588_s18, 0 }
   0xf   : > { %p915_p4 = por %p55_p2, %p54_p1  ;;  %s42_s23 = ssub.s32 %s835_s16, %s1146_s20 }
  0x10   : > { %p112_p6 = scmp.eq.s32.totalorder %s588_s18, 1  ;;  %p45_p7 = scmp.eq.s32.totalorder %s42_s23, 0 }
  0x11   : > { %p921_p8 = por %p61_p5, %p60_p3  ;;  %p118_p10 = scmp.eq.s32.totalorder %s589_s19, 1 }
  0x12   : > { %p925_p9 = por %p112_p6, %p54_p1  ;;  %p1133_p12 = scmp.ge.s32.totalorder %s839_s17, 2 }
  0x13   : > { %s930_s26 = scalar_select %p45_p7, %s827_s14, %s47_s21  }
  0x14   : > { %p932_p11 = por %p118_p10, %p60_p3  ;;  %160 = sbr.rel (%p1133_p12) target bundleno = 78 (0x4e), region = 16 }
  0x16   : > { %s1137_s27 = scalar_select %p932_p11, 1, 0 }
  0x1b   : > { %163 = sbr.rel (!%p915_p4) target bundleno = 47 (0x2f), region = 20 }
  0x22   : > { %s164_s28 = sand.u32 1, %s827_s14  }
  0x23   : > { %s592_s29 = sshll.u32 %s164_s28, 5  ;;  %s165_s30 = scalar_lea.sflag [#allocation3], %s164_s28 }
  0x24   : > { %s168_s4 = scalar_lea.vmem [#allocation2], %s592_s29 }
  0x25   : > { %174 = vsyncadd %s165_s30, 384  ;;  %s612_s5 = sshll.u32 %s835_s16, 7  ;;  %s186_s6 = sld [smem:[#allocation0]]  }
  0x26   : > { %s179_s9 = scalar_lea.hbm %s1129_s0, %s612_s5  ;;  %s194_s10 = sshll.u32 %s168_s4, 4  ;;  %s195_s10 = int_to_ptr.vmem [resolvable:$true] %s194_s10 }
  0x27   : > { %s841_s11 = smov 32   ;;  %s842_s18 = smov 128  }
  0x28   : > { %201 = sst [smem:[#allocation11]] %s841_s11  ;;  %s843_s19 = smov 1  }
  0x29   : > { %203 = sst [smem:[#allocation11 + $0x1]] %s842_s18  ;;  %s844_s28 = smov 2  }
  0x2a   : > { %205 = sst [smem:[#allocation11 + $0x2]] %s843_s19  ;;  %s845_s29 = smov [#allocation10]  }
  0x2b   : > { %s595_s21 = sshll.u32 %s186_s6, 26  ;;  %207 = sst [smem:[#allocation11 + $0x3]] %s841_s11 }
  0x2c   : > { %s596_s23 = sadd.s32 134217728, %s595_s21  ;;  %209 = sst [smem:[#allocation11 + $0x4]] %s841_s11 }
  0x2d   : > { %211 = sst [smem:[#allocation11 + $0x5]] %s844_s28 }
  0x2e   : > { %213 = dma.general %s179_s9, 128, %s195_s10, %s165_s30, %s845_s29, [#allocation11], %s596_s23, 0  }
  0x2f PF: > { %216 = sbr.rel (!%p915_p4) target bundleno = 78 (0x4e), region = 24  ;;  %s217_s4 = sand.u32 (%p915_p4), 1, %s827_s14  }
  0x30   : > { %s597_s5 = sshll.u32 (%p915_p4), %s217_s4, 3  ;;  %s949_s7 = scalar_lea.sflag (%p915_p4), [#allocation6], %s217_s4 }
  0x31   : > { %s221_s8 = scalar_lea.vmem (%p915_p4), [#allocation5], %s597_s5 }
  0x36   : > { %227 = vsyncadd %s949_s7, 96  ;;  %s598_s6 = sshll.u32 %s835_s16, 5  ;;  %s233_s18 = sshll.u32 %s221_s8, 4  ;;  %s234_s18 = int_to_ptr.vmem [resolvable:$true] %s233_s18 }
  0x37   : > { %s956_s21 = scalar_lea.hbm %s1130_s1, %s598_s6  ;;  %s699_s10 = scalar_lea.hbm %s1130_s1, 64 }
  0x38   : > { %s697_s22 = scalar_lea.hbm %s956_s21, 32  ;;  %p700_p0 = scmp.lt.u32.totalorder %s956_s21, %s1130_s1 }
  0x39   : > { %p698_p13 = scmp.ne.s32.totalorder %s956_s21, %s697_s22  ;;  %p701_p1 = scmp.lt.u32.totalorder %s699_s10, %s697_s22 }
  0x3a   : > { %p703_p3 = scmp.lt.u32.totalorder %s697_s22, %s956_s21 }
  0x3b   : > { %p702_p2 = por %p701_p1, %p700_p0 }
  0x3d   : > { %p704_p4 = por %p703_p3, %p702_p2 }
  0x3f   : > { %p705_p5 = pnand %p704_p4, %p698_p13 }
  0x41   : > { %708 = shalt.err (!%p705_p5)
}
  0x42   : > { %s709_s29 = scalar_lea.vmem %s234_s18, 32  ;;  %s846_s4 = smov [#allocation5]  }
  0x43   : > { %p710_p6 = scmp.ne.s32.totalorder %s234_s18, %s709_s29  ;;  %s711_s5 = sshll.u32 %s846_s4, 4  ;;  %s712_s5 = int_to_ptr.vmem [resolvable:$false] %s711_s5 }
  0x44   : > { %s713_s8 = scalar_lea.vmem %s712_s5, 256  ;;  %p714_p7 = scmp.lt.s32.totalorder %s234_s18, %s712_s5 }
  0x45   : > { %p715_p10 = scmp.lt.s32.totalorder %s713_s8, %s709_s29 }
  0x47   : > { %p716_p12 = por %p715_p10, %p714_p7 }
  0x49   : > { %p717_p11 = pnand %p716_p12, %p710_p6 }
  0x4b   : > { %720 = shalt.err (!%p717_p11)
}
  0x4c   : > { %s847_s6 = smov 32   ;;  %s848_s11 = smov 2  }
  0x4d   : > { %239 = dma.hbm_to_vmem [thread:$0]  %s956_s21, 32, %s234_s18, %s949_s7, %s847_s6, %s847_s6, %s848_s11  }
  0x4e PF: > { %p599_p13 = scmp.ge.s32.totalorder %s839_s17, 1  ;;  %p241_p0 = scmp.lt.s32.totalorder %s839_s17, 3 }
  0x50   : > { %p242_p1 = pnand %p599_p13, %p241_p0 }
  0x51   : > { %s973_s19 = sand.u32 (!%p242_p1), 1, %s823_s13  }
  0x52   : > { %245 = sbr.rel (%p242_p1) target bundleno = 189 (0xbd), region = 28  ;;  %s976_s22 = sshll.u32 (!%p242_p1), %s973_s19, 5 }
  0x53   : > { %s248_s30 = scalar_lea.sflag (!%p242_p1), [#allocation3], %s973_s19  ;;  %s251_s9 = scalar_lea.vmem (!%p242_p1), [#allocation2], %s976_s22 }
  0x59   : > { %802 = dma.done.wait (%p921_p8), %s248_s30, 512  }
  0x5a   : > { %804 = vsyncadd (%p921_p8), %s248_s30, 4294966784  ;;  %s601_s7 = sshll.u32 %s973_s19, 3  ;;  %s257_s18 = scalar_lea.sflag [#allocation6], %s973_s19 }
  0x5b   : > { %s986_s21 = scalar_lea.vmem [#allocation5], %s601_s7 }
  0x5c   : > { %806 = dma.done.wait (%p921_p8), %s257_s18, 128  }
  0x5d   : > { %808 = vsyncadd (%p921_p8), %s257_s18, 4294967168  ;;  %v316_v0 = vlaneseq  ;;  %v311_v5 = vld [vmem:[%s251_s9] sm:$0xff]  ;;  %v312_v6 = vld [vmem:[%s251_s9 + $0x8] sm:$0xff]  ;;  %s613_s24 = sshll.u32 %s831_s15, 9  ;;  %s285_s10 = scalar_lea.vmem [#allocation7], %s976_s22  ;;  %v849_v41 = vmov 0.0  }
  0x5e   : > { %v313_v7 = vld [vmem:[%s251_s9 + $0x10] sm:$0xff]  ;;  %v314_v8 = vld [vmem:[%s251_s9 + $0x18] sm:$0xff]  ;;  %v315_v31 = vld [vmem:[%s986_s21] sm:$0xff]  ;;  %s431_s23 = sshll.u32 %s285_s10, 4  ;;  %s1021_s4 = scalar_lea.hbm %s1131_s2, %s613_s24  ;;  %s1023_s23 = int_to_ptr.vmem [resolvable:$true] %s431_s23 }
  0x5f   : > { %v317_v1 = vshrl.u32 %v316_v0, 7  ;;  %v319_v2 = vand.u32 127, %v316_v0  ;;  %s1034_s5 = scalar_lea.vmem [#allocation8], %s976_s22  ;;  %s413_s6 = scalar_lea.sflag [#allocation4], %s973_s19 }
  0x60   : > { %s447_s8 = sshll.u32 %s1034_s5, 4  ;;  %s721_s11 = scalar_lea.vmem %s1023_s23, 512  ;;  %s1073_s8 = int_to_ptr.vmem [resolvable:$true] %s447_s8 }
  0x61   : > { %v324_v3 = vmul.u32 128, %v317_v1  ;;  %p722_p8 = scmp.ne.s32.totalorder %s1023_s23, %s721_s11  ;;  %s850_s30 = smov [#allocation7]  }
  0x62   : > { %s725_s22 = sshll.u32 %s850_s30, 4  ;;  %s726_s22 = int_to_ptr.vmem [resolvable:$false] %s725_s22 }
  0x63   : > { %v992_v4 = vadd.s32 %v324_v3, %v319_v2  ;;  %p723_p11 = pnand %p722_p8, %p925_p9  ;;  %s727_s9 = scalar_lea.vmem %s726_s22, 1024 }
  0x64   : > { %p728_p2 = scmp.lt.s32.totalorder %s1023_s23, %s726_s22  ;;  %p729_p3 = scmp.lt.s32.totalorder %s727_s9, %s721_s11 }
  0x65   : > { %vm326_vm0 = vcmp.lt.s32.totalorder %v992_v4, 256  ;;  %p724_p12 = pneg %p723_p11 }
  0x66   : > { %v329_v9 = vsel %vm326_vm0, %v311_v5, 0.0  ;;  %v330_v10 = vsel %vm326_vm0, %v312_v6, 0.0  ;;  %v331_v11 = vsel %vm326_vm0, %v313_v7, 0.0  ;;  %v332_v12 = vsel %vm326_vm0, %v314_v8, 0.0  ;;  %p730_p4 = por %p729_p3, %p728_p2 }
  0x67   : > { %v334_v13 = vmax.f32 %v329_v9, %v330_v10  ;;  %v335_v14 = vmax.f32 %v331_v11, %v332_v12  ;;  %v333_v33 = vsel %vm326_vm0, %v315_v31, 4294967295 }
  0x68   : > { %vm360_vm1 = vcmp.eq.s32.totalorder %v333_v33, 0  ;;  %vm361_vm2 = vcmp.eq.s32.totalorder %v333_v33, 1  ;;  %vm362_vm3 = vcmp.eq.s32.totalorder %v333_v33, 2  ;;  %vm363_vm4 = vcmp.eq.s32.totalorder %v333_v33, 3  ;;  %p731_p5 = pnand %p730_p4, %p724_p12 }
  0x69   : > { %v336_v15 = vmax.f32 %v334_v13, %v335_v14  ;;  %v368_v42 = vsel %vm360_vm1, 1.0, %v849_v41  ;;  %v369_v43 = vsel %vm361_vm2, 1.0, %v849_v41  ;;  %v370_v44 = vsel %vm362_vm3, 1.0, %v849_v41 }
  0x6a   : > { %v371_v45 = vsel %vm363_vm4, 1.0, %v849_v41 }
  0x6b   : > { %v337_v16 = vsub.f32 %v329_v9, %v336_v15  ;;  %v338_v17 = vsub.f32 %v330_v10, %v336_v15  ;;  %v339_v18 = vsub.f32 %v331_v11, %v336_v15  ;;  %v340_v19 = vsub.f32 %v332_v12, %v336_v15 }
  0x6d   : > { %v341_v20 = vmul.f32 1.442695, %v337_v16  ;;  %v343_v21 = vmul.f32 1.442695, %v338_v17  ;;  %v345_v22 = vmul.f32 1.442695, %v339_v18 }
  0x6e   : > { %v347_v23 = vmul.f32 1.442695, %v340_v19 }
  0x6f   : > { %687 = vpow2.f32 %v341_v20 }
  0x70   : > { %689 = vpow2.f32 %v343_v21 }
  0x71   : > { %691 = vpow2.f32 %v345_v22 }
  0x72   : > { %693 = vpow2.f32 %v347_v23 }
  0x79   : > { %v688_v24 = vpop.eup %687 }
  0x7a   : > { %v690_v25 = vpop.eup %689 }
  0x7b   : > { %v692_v26 = vpop.eup %691  ;;  %v349_v27 = vadd.f32 %v690_v25, %v688_v24 }
  0x7c   : > { %v694_v28 = vpop.eup %693 }
  0x7d   : > { %v350_v29 = vadd.f32 %v692_v26, %v349_v27 }
  0x7f   : > { %v351_v30 = vadd.f32 %v694_v28, %v350_v29 }
  0x81   : > { %695 = vrcp.f32 %v351_v30 }
  0x8b   : > { %v696_v32 = vpop.eup %695 }
  0x8c   : > { %v353_v34 = vmul.f32 %v696_v32, %v351_v30 }
  0x8e   : > { %v354_v35 = vsub.f32 2.0, %v353_v34 }
  0x90   : > { %v355_v36 = vmul.f32 %v696_v32, %v354_v35 }
  0x92   : > { %v356_v37 = vmul.f32 %v688_v24, %v355_v36  ;;  %v357_v38 = vmul.f32 %v690_v25, %v355_v36  ;;  %v358_v39 = vmul.f32 %v692_v26, %v355_v36  ;;  %v359_v40 = vmul.f32 %v694_v28, %v355_v36 }
  0x94   : > { %v364_v46 = vsel %vm360_vm1, %v356_v37, 0.0  ;;  %v365_v47 = vsel %vm361_vm2, %v357_v38, 0.0  ;;  %v366_v48 = vsel %vm362_vm3, %v358_v39, 0.0  ;;  %v367_v49 = vsel %vm363_vm4, %v359_v40, 0.0 }
  0x95   : > { %v372_v50 = vsel %vm326_vm0, %v356_v37, 0.0  ;;  %v373_v51 = vsel %vm326_vm0, %v357_v38, 0.0  ;;  %v374_v52 = vsel %vm326_vm0, %v358_v39, 0.0  ;;  %v375_v53 = vsel %vm326_vm0, %v359_v40, 0.0  ;;  %396 = vst [vmem:[%s285_s10] sm:$0xff] %v364_v46  ;;  %397 = vst [vmem:[%s285_s10 + $0x8] sm:$0xff] %v365_v47 }
  0x96   : > { %398 = vst [vmem:[%s285_s10 + $0x10] sm:$0xff] %v366_v48  ;;  %399 = vst [vmem:[%s285_s10 + $0x18] sm:$0xff] %v367_v49  ;;  %v376_v54 = vadd.f32 %v372_v50, %v368_v42  ;;  %v377_v55 = vadd.f32 %v373_v51, %v369_v43  ;;  %v378_v56 = vadd.f32 %v374_v52, %v370_v44 }
  0x97   : > { %v379_v57 = vadd.f32 %v375_v53, %v371_v45 }
  0x98   : > { %734 = shalt.err (!%p731_p5)
}
  0x99   : > { %s735_s7 = scalar_lea.hbm %s1021_s4, 512  ;;  %s739_s10 = scalar_lea.hbm %s1131_s2, 1024 }
  0x9a   : > { %p736_p6 = scmp.ne.s32.totalorder %s1021_s4, %s735_s7  ;;  %p740_p13 = scmp.lt.u32.totalorder %s1021_s4, %s1131_s2 }
  0x9b   : > { %p741_p0 = scmp.lt.u32.totalorder %s739_s10, %s735_s7  ;;  %p743_p8 = scmp.lt.u32.totalorder %s735_s7, %s1021_s4 }
  0x9c   : > { %p737_p7 = pnand %p736_p6, %p925_p9 }
  0x9d   : > { %p742_p1 = por %p741_p0, %p740_p13 }
  0x9e   : > { %p738_p10 = pneg %p737_p7 }
  0x9f   : > { %p744_p11 = por %p743_p8, %p742_p1 }
  0xa1   : > { %p745_p12 = pnand %p744_p11, %p738_p10 }
  0xa3   : > { %748 = shalt.err (!%p745_p12)
}
  0xa4   : > { %s851_s11 = smov 128   ;;  %s852_s30 = smov 8   ;;  %408 = vst [vmem:[%s1034_s5] sm:$0xff] %v376_v54  ;;  %409 = vst [vmem:[%s1034_s5 + $0x8] sm:$0xff] %v377_v55 }
  0xa5   : > { %617 = dma.vmem_to_hbm [thread:$0]  (%p925_p9), %s1023_s23, 512, %s1021_s4, %s413_s6, %s851_s11, %s851_s11, %s852_s30  }
  0xa6   : > { %s1069_s7 = scalar_lea.hbm %s1132_s3, %s613_s24  ;;  %410 = vst [vmem:[%s1034_s5 + $0x10] sm:$0xff] %v378_v56  ;;  %411 = vst [vmem:[%s1034_s5 + $0x18] sm:$0xff] %v379_v57  ;;  %s418_s18 = scalar_lea.sflag [#allocation9], %s973_s19 }
  0xa7   : > { %s749_s21 = scalar_lea.vmem %s1073_s8, 512  ;;  %s853_s15 = smov [#allocation8]  }
  0xa8   : > { %p750_p2 = scmp.ne.s32.totalorder %s1073_s8, %s749_s21  ;;  %s753_s23 = sshll.u32 %s853_s15, 4  ;;  %s754_s23 = int_to_ptr.vmem [resolvable:$false] %s753_s23 }
  0xa9   : > { %s755_s24 = scalar_lea.vmem %s754_s23, 1024  ;;  %p756_p5 = scmp.lt.s32.totalorder %s1073_s8, %s754_s23 }
  0xaa   : > { %p751_p3 = pnand %p750_p2, %p925_p9  ;;  %p757_p6 = scmp.lt.s32.totalorder %s755_s24, %s749_s21 }
  0xac   : > { %p752_p4 = pneg %p751_p3  ;;  %p758_p7 = por %p757_p6, %p756_p5 }
  0xae   : > { %p759_p10 = pnand %p758_p7, %p752_p4 }
  0xb0   : > { %762 = shalt.err (!%p759_p10)
}
  0xb1   : > { %s763_s4 = scalar_lea.hbm %s1069_s7, 512  ;;  %s767_s10 = scalar_lea.hbm %s1132_s3, 1024 }
  0xb2   : > { %p764_p13 = scmp.ne.s32.totalorder %s1069_s7, %s763_s4  ;;  %p768_p8 = scmp.lt.u32.totalorder %s1069_s7, %s1132_s3 }
  0xb3   : > { %p769_p11 = scmp.lt.u32.totalorder %s767_s10, %s763_s4  ;;  %p771_p2 = scmp.lt.u32.totalorder %s763_s4, %s1069_s7 }
  0xb4   : > { %p765_p0 = pnand %p764_p13, %p925_p9 }
  0xb5   : > { %p770_p12 = por %p769_p11, %p768_p8 }
  0xb6   : > { %p766_p1 = pneg %p765_p0 }
  0xb7   : > { %p772_p3 = por %p771_p2, %p770_p12 }
  0xb9   : > { %p773_p4 = pnand %p772_p3, %p766_p1 }
  0xbb   : > { %776 = shalt.err (!%p773_p4)
}
  0xbc   : > { %618 = dma.vmem_to_hbm [thread:$0]  (%p925_p9), %s1073_s8, 512, %s1069_s7, %s418_s18, %s851_s11, %s851_s11, %s852_s30  }
  0xbd PF: > { %s462_s22 = sand.u32 1, %s819_s12   ;;  %p1138_p5 = scmp.ne.s32.totalorder %s1137_s27, 0 }
  0xbe   : > { %p1139_p6 = scmp.ge.s32.totalorder %s839_s17, 2  ;;  %s463_s9 = scalar_lea.sflag [#allocation4], %s462_s22 }
  0xc0   : > { %p622_p7 = pnand %p1139_p6, %p1138_p5 }
  0xc2   : > { %810 = dma.done.wait (!%p622_p7), %s463_s9, 512  }
  0xc3   : > { %812 = vsyncadd (!%p622_p7), %s463_s9, 4294966784  ;;  %s472_s25 = scalar_lea.sflag [#allocation9], %s462_s22 }
  0xc4   : > { %814 = dma.done.wait (!%p622_p7), %s472_s25, 512  }
  0xc5   : > { %816 = vsyncadd (!%p622_p7), %s472_s25, 4294966784  ;;  %s26_s17 = sadd.s32 1, %s839_s17   ;;  %s1140_s12 = smov %s823_s13 }
  0xc6   : > { %p23_p10 = scmp.ge.s32.totalorder %s26_s17, 4   ;;  %s1141_s13 = smov %s827_s14 }
  0xc7   : > { %s1142_s14 = smov %s930_s26  ;;  %s1143_s15 = smov %s835_s16 }
  0xc8   : > { %s1144_s16 = smov %s1146_s20  ;;  %25 = sbr.rel (!%p23_p10) target bundleno = 10 (0xa), region = 112 }
  0xcf   :  { %477 = vsyncpa [#allocation3], 1 }
  0xd0   :  { %479 = vsyncpa [#allocation3 + $0x1], 1 }
  0xd1   :  { %480 = vsyncpa [#allocation6], 1 }
  0xd2   :  { %482 = vsyncpa [#allocation6 + $0x1], 1 }
  0xd3   :  { %483 = vsyncpa [#allocation4], 1 }
  0xd4   :  { %485 = vsyncpa [#allocation4 + $0x1], 1 }
  0xd5   :  { %486 = vsyncpa [#allocation9], 1 }
  0xd6   :  { %488 = vsyncpa [#allocation9 + $0x1], 1 }

</bundles_post_ra>
